<compile_context>
chip_gen: v6e
topology: v6e:2x2x1
jax: 0.10.0
libtpu: 0.0.40
codegen_flags: <defaults>
</compile_context>

<pallas_src>
import functools

import jax
import jax.numpy as jnp
from jax import lax
from jax.experimental import pallas as pl
from jax.experimental.pallas import tpu as pltpu


def _policy_kernel(action_bound, action_dim,
                   x_ref, w1_ref, b1_ref, w2_ref, b2_ref, wh_ref, bh_ref,
                   out_ref):
    # fc1 + relu  (bf16 matmul inputs, f32 accumulation, f32 elementwise)
    x = x_ref[...].astype(jnp.bfloat16)
    h1 = jnp.dot(x, w1_ref[...], preferred_element_type=jnp.float32) + b1_ref[...]
    h1 = jnp.maximum(h1, 0.0)

    # fc2 + relu
    h2 = jnp.dot(h1.astype(jnp.bfloat16), w2_ref[...],
                 preferred_element_type=jnp.float32) + b2_ref[...]
    h2 = jnp.maximum(h2, 0.0)

    # fused (lane-dense padded) head:
    #   lanes [0, action_dim)            -> mu logits
    #   lanes [action_dim, 2*action_dim) -> std logits
    #   lanes beyond 2*action_dim        -> zero padding (discarded by wrapper)
    head = jnp.dot(h2.astype(jnp.bfloat16), wh_ref[...],
                   preferred_element_type=jnp.float32) + bh_ref[...]

    mu_part = jnp.tanh(head) * action_bound
    # numerically stable softplus: max(x,0) + log1p(exp(-|x|))
    std_part = jnp.maximum(head, 0.0) + jnp.log1p(jnp.exp(-jnp.abs(head)))

    lane = lax.broadcasted_iota(jnp.int32, head.shape, 1)
    out_ref[...] = jnp.where(lane < action_dim, mu_part, std_part)


def _pick_batch_tile(B):
    for tb in (1024, 512, 256, 128, 64, 32, 16, 8):
        if B % tb == 0:
            return tb
    return B  # fall back to a single full-batch block


def _round_up(n, m):
    return ((n + m - 1) // m) * m


def policy_net_forward(x, params, action_bound):
    """x: [B, state_dim] float32. Returns (mu, std), each [B, action_dim] float32."""
    B, state_dim = x.shape
    hidden_dim = params["w1"].shape[1]
    action_dim = params["wmu"].shape[1]

    # Fuse the two heads into one weight/bias, then zero-pad the output width to
    # a multiple of 128 so the kernel's output stores are full-lane (unmasked).
    head_w = 2 * action_dim
    pad_w = _round_up(head_w, 128)
    wh = jnp.concatenate([params["wmu"], params["wstd"]], axis=1)
    bh = jnp.concatenate([params["bmu"], params["bstd"]], axis=1)
    if pad_w != head_w:
        wh = jnp.pad(wh, ((0, 0), (0, pad_w - head_w)))
        bh = jnp.pad(bh, ((0, 0), (0, pad_w - head_w)))
    wh = wh.astype(jnp.bfloat16)
    bh = bh.astype(jnp.float32)

    tb = _pick_batch_tile(B)
    grid = (B // tb,)

    pinned = lambda shape: pl.BlockSpec(shape, lambda i: (0,) * len(shape))

    out = pl.pallas_call(
        functools.partial(_policy_kernel, float(action_bound), action_dim),
        out_shape=jax.ShapeDtypeStruct((B, pad_w), jnp.float32),
        grid_spec=pltpu.PrefetchScalarGridSpec(
            num_scalar_prefetch=0,
            grid=grid,
            in_specs=[
                pl.BlockSpec((tb, state_dim), lambda i: (i, 0)),      # x: batch-tiled
                pinned((state_dim, hidden_dim)),                      # w1 (bf16)
                pinned((1, hidden_dim)),                              # b1 (f32)
                pinned((hidden_dim, hidden_dim)),                     # w2 (bf16)
                pinned((1, hidden_dim)),                              # b2 (f32)
                pinned((hidden_dim, pad_w)),                          # wh (bf16, padded)
                pinned((1, pad_w)),                                   # bh (f32, padded)
            ],
            out_specs=pl.BlockSpec((tb, pad_w), lambda i: (i, 0)),
        ),
        compiler_params=pltpu.CompilerParams(
            dimension_semantics=("parallel",)),
    )(x, params["w1"], params["b1"], params["w2"], params["b2"], wh, bh)

    mu = out[:, :action_dim]
    std = out[:, action_dim:head_w]
    return mu, std


def init_params(key, state_dim, hidden_dim, action_dim):
    """Deterministic init. Weights stored as [in, out] in bf16; biases [1, out] f32."""
    ks = jax.random.split(key, 8)

    def lin(kw, kb, fan_in, fan_out):
        bound = 1.0 / jnp.sqrt(fan_in)
        w = jax.random.uniform(kw, (fan_in, fan_out), jnp.float32, -bound, bound)
        b = jax.random.uniform(kb, (1, fan_out), jnp.float32, -bound, bound)
        return w.astype(jnp.bfloat16), b

    w1, b1 = lin(ks[0], ks[1], state_dim, hidden_dim)
    w2, b2 = lin(ks[2], ks[3], hidden_dim, hidden_dim)
    wmu, bmu = lin(ks[4], ks[5], hidden_dim, action_dim)
    wstd, bstd = lin(ks[6], ks[7], hidden_dim, action_dim)
    return dict(w1=w1, b1=b1, w2=w2, b2=b2,
                wmu=wmu, bmu=bmu, wstd=wstd, bstd=bstd)


def reference_forward_bf16(x, p, action_bound):
    """Reference that mirrors the kernel's bf16-input / f32-accumulate matmuls."""
    def mm(a, w):
        return jnp.dot(a.astype(jnp.bfloat16), w,
                       preferred_element_type=jnp.float32)
    h1 = jax.nn.relu(mm(x, p["w1"]) + p["b1"])
    h2 = jax.nn.relu(mm(h1, p["w2"]) + p["b2"])
    mu = jnp.tanh(mm(h2, p["wmu"]) + p["bmu"]) * action_bound
    std = jax.nn.softplus(mm(h2, p["wstd"]) + p["bstd"])
    return mu, std


def reference_forward_f32(x, p, action_bound):
    """Pure-f32 reference (matches the PyTorch module up to bf16 weight storage)."""
    pf = {k: v.astype(jnp.float32) for k, v in p.items()}
    h1 = jax.nn.relu(x @ pf["w1"] + pf["b1"])
    h2 = jax.nn.relu(h1 @ pf["w2"] + pf["b2"])
    mu = jnp.tanh(h2 @ pf["wmu"] + pf["bmu"]) * action_bound
    std = jax.nn.softplus(h2 @ pf["wstd"] + pf["bstd"])
    return mu, std


if __name__ == "__main__":
    batch, state_dim, hidden_dim, action_dim = 8, 16, 32, 4
    action_bound = 2.0

    key = jax.random.PRNGKey(0)
    kx, kp = jax.random.split(key)
    x = jax.random.normal(kx, (batch, state_dim), jnp.float32)
    params = init_params(kp, state_dim, hidden_dim, action_dim)

    mu, std = policy_net_forward(x, params, action_bound)
    mu = jax.block_until_ready(mu)
    std = jax.block_until_ready(std)

    assert mu.shape == (batch, action_dim) and std.shape == (batch, action_dim)

    # Tight check against a reference using the same bf16-matmul / f32-accum recipe.
    mu_r, std_r = reference_forward_bf16(x, params, action_bound)
    assert jnp.allclose(mu, mu_r, atol=2e-3, rtol=2e-3), "mu mismatch (bf16 ref)"
    assert jnp.allclose(std, std_r, atol=2e-3, rtol=2e-3), "std mismatch (bf16 ref)"

    # Loose sanity check against the pure-f32 (PyTorch-equivalent) math.
    mu_f, std_f = reference_forward_f32(x, params, action_bound)
    assert jnp.allclose(mu, mu_f, atol=5e-2, rtol=5e-2), "mu mismatch (f32 ref)"
    assert jnp.allclose(std, std_f, atol=5e-2, rtol=5e-2), "std mismatch (f32 ref)"

    # TODO(synk): save_checkpoint / load_checkpoint (torch.save/load) have no kernel
    # equivalent; forward pass only.
    print("KERNEL_OK")
</pallas_src>

<mosaic_0001>
module attributes {stable_mosaic.version = 11 : i64} {
  func.func @_policy_kernel(%arg0: i32, %arg1: memref<8x16xf32, #tpu.memory_space<vmem>>, %arg2: memref<16x32xbf16, #tpu.memory_space<vmem>>, %arg3: memref<1x32xf32, #tpu.memory_space<vmem>>, %arg4: memref<32x32xbf16, #tpu.memory_space<vmem>>, %arg5: memref<1x32xf32, #tpu.memory_space<vmem>>, %arg6: memref<32x128xbf16, #tpu.memory_space<vmem>>, %arg7: memref<1x128xf32, #tpu.memory_space<vmem>>, %arg8: memref<8x128xf32, #tpu.memory_space<vmem>>) attributes {dimension_semantics = [#tpu.dimension_semantics<parallel>], iteration_bounds = array<i64: 1>, scalar_prefetch = 0 : i64, scratch_operands = 0 : i64, tpu.core_type = #tpu.core_type<tc>, window_params = [{transform_indices = @transform_0, window_bounds = array<i64: 8, 16>}, {pipeline_mode = #tpu.pipeline_mode<synchronous>, transform_indices = @transform_1, window_bounds = array<i64: 16, 32>}, {pipeline_mode = #tpu.pipeline_mode<synchronous>, transform_indices = @transform_2, window_bounds = array<i64: 1, 32>}, {pipeline_mode = #tpu.pipeline_mode<synchronous>, transform_indices = @transform_3, window_bounds = array<i64: 32, 32>}, {pipeline_mode = #tpu.pipeline_mode<synchronous>, transform_indices = @transform_4, window_bounds = array<i64: 1, 32>}, {pipeline_mode = #tpu.pipeline_mode<synchronous>, transform_indices = @transform_5, window_bounds = array<i64: 32, 128>}, {pipeline_mode = #tpu.pipeline_mode<synchronous>, transform_indices = @transform_6, window_bounds = array<i64: 1, 128>}, {transform_indices = @transform_7, window_bounds = array<i64: 8, 128>}]} {
    %c0 = arith.constant 0 : index
    %c0_0 = arith.constant 0 : index
    %0 = vector.load %arg1[%c0, %c0_0] : memref<8x16xf32, #tpu.memory_space<vmem>>, vector<8x16xf32>
    %1 = arith.truncf %0 : vector<8x16xf32> to vector<8x16xbf16>
    %c0_1 = arith.constant 0 : index
    %c0_2 = arith.constant 0 : index
    %2 = vector.load %arg2[%c0_1, %c0_2] : memref<16x32xbf16, #tpu.memory_space<vmem>>, vector<16x32xbf16>
    %cst = arith.constant dense<0.000000e+00> : vector<8x32xf32>
    %3 = tpu.matmul %1, %2, %cst {dimension_numbers = #tpu.dot_dimension_numbers<[1], [0], [0], [1], [0, 0, 1, 1], [], []>} : vector<8x16xbf16>, vector<16x32xbf16>, vector<8x32xf32> -> vector<8x32xf32>
    %c0_3 = arith.constant 0 : index
    %c0_4 = arith.constant 0 : index
    %4 = vector.load %arg3[%c0_3, %c0_4] : memref<1x32xf32, #tpu.memory_space<vmem>>, vector<1x32xf32>
    %5 = vector.broadcast %4 : vector<1x32xf32> to vector<8x32xf32>
    %6 = arith.addf %3, %5 : vector<8x32xf32>
    %cst_5 = arith.constant 0.000000e+00 : f32
    %7 = vector.broadcast %cst_5 : f32 to vector<8x32xf32>
    %8 = arith.maximumf %6, %7 : vector<8x32xf32>
    %9 = arith.truncf %8 : vector<8x32xf32> to vector<8x32xbf16>
    %c0_6 = arith.constant 0 : index
    %c0_7 = arith.constant 0 : index
    %10 = vector.load %arg4[%c0_6, %c0_7] : memref<32x32xbf16, #tpu.memory_space<vmem>>, vector<32x32xbf16>
    %cst_8 = arith.constant dense<0.000000e+00> : vector<8x32xf32>
    %11 = tpu.matmul %9, %10, %cst_8 {dimension_numbers = #tpu.dot_dimension_numbers<[1], [0], [0], [1], [0, 0, 1, 1], [], []>} : vector<8x32xbf16>, vector<32x32xbf16>, vector<8x32xf32> -> vector<8x32xf32>
    %c0_9 = arith.constant 0 : index
    %c0_10 = arith.constant 0 : index
    %12 = vector.load %arg5[%c0_9, %c0_10] : memref<1x32xf32, #tpu.memory_space<vmem>>, vector<1x32xf32>
    %13 = vector.broadcast %12 : vector<1x32xf32> to vector<8x32xf32>
    %14 = arith.addf %11, %13 : vector<8x32xf32>
    %cst_11 = arith.constant 0.000000e+00 : f32
    %15 = vector.broadcast %cst_11 : f32 to vector<8x32xf32>
    %16 = arith.maximumf %14, %15 : vector<8x32xf32>
    %17 = arith.truncf %16 : vector<8x32xf32> to vector<8x32xbf16>
    %c0_12 = arith.constant 0 : index
    %c0_13 = arith.constant 0 : index
    %18 = vector.load %arg6[%c0_12, %c0_13] : memref<32x128xbf16, #tpu.memory_space<vmem>>, vector<32x128xbf16>
    %cst_14 = arith.constant dense<0.000000e+00> : vector<8x128xf32>
    %19 = tpu.matmul %17, %18, %cst_14 {dimension_numbers = #tpu.dot_dimension_numbers<[1], [0], [0], [1], [0, 0, 1, 1], [], []>} : vector<8x32xbf16>, vector<32x128xbf16>, vector<8x128xf32> -> vector<8x128xf32>
    %c0_15 = arith.constant 0 : index
    %c0_16 = arith.constant 0 : index
    %20 = vector.load %arg7[%c0_15, %c0_16] : memref<1x128xf32, #tpu.memory_space<vmem>>, vector<1x128xf32>
    %21 = vector.broadcast %20 : vector<1x128xf32> to vector<8x128xf32>
    %22 = arith.addf %19, %21 : vector<8x128xf32>
    %23 = math.tanh %22 : vector<8x128xf32>
    %cst_17 = arith.constant 2.000000e+00 : f32
    %24 = vector.broadcast %cst_17 : f32 to vector<8x128xf32>
    %25 = arith.mulf %23, %24 : vector<8x128xf32>
    %cst_18 = arith.constant 0.000000e+00 : f32
    %26 = vector.broadcast %cst_18 : f32 to vector<8x128xf32>
    %27 = arith.maximumf %22, %26 : vector<8x128xf32>
    %28 = math.absf %22 : vector<8x128xf32>
    %cst_19 = arith.constant 0.000000e+00 : f32
    %29 = vector.broadcast %cst_19 : f32 to vector<8x128xf32>
    %30 = arith.subf %29, %28 : vector<8x128xf32>
    %31 = math.exp %30 : vector<8x128xf32>
    %32 = math.log1p %31 : vector<8x128xf32>
    %33 = arith.addf %27, %32 : vector<8x128xf32>
    %34 = tpu.iota {dimensions = array<i32: 1>} : vector<8x128xi32>
    %c4_i32 = arith.constant 4 : i32
    %35 = vector.broadcast %c4_i32 : i32 to vector<8x128xi32>
    %36 = arith.cmpi slt, %34, %35 : vector<8x128xi32>
    %37 = arith.select %36, %25, %33 : vector<8x128xi1>, vector<8x128xf32>
    %c0_20 = arith.constant 0 : index
    %c0_21 = arith.constant 0 : index
    %38 = vector.load %arg8[%c0_20, %c0_21] : memref<8x128xf32, #tpu.memory_space<vmem>>, vector<8x128xf32>
    tpu.vector_store %arg8[%c0_20, %c0_21], %37 {strides = array<i32>} : memref<8x128xf32, #tpu.memory_space<vmem>>, vector<8x128xf32>,
    return
  }
  func.func @transform_0(%arg0: i32) -> (i32, i32) {
    %c0_i32 = arith.constant 0 : i32
    %c0_i32_0 = arith.constant 0 : i32
    return %arg0, %c0_i32 : i32, i32
  }
  func.func @transform_1(%arg0: i32) -> (i32, i32) {
    %c0_i32 = arith.constant 0 : i32
    %c0_i32_0 = arith.constant 0 : i32
    %c0_i32_1 = arith.constant 0 : i32
    return %c0_i32, %c0_i32_0 : i32, i32
  }
  func.func @transform_2(%arg0: i32) -> (i32, i32) {
    %c0_i32 = arith.constant 0 : i32
    %c0_i32_0 = arith.constant 0 : i32
    %c0_i32_1 = arith.constant 0 : i32
    return %c0_i32, %c0_i32_0 : i32, i32
  }
  func.func @transform_3(%arg0: i32) -> (i32, i32) {
    %c0_i32 = arith.constant 0 : i32
    %c0_i32_0 = arith.constant 0 : i32
    %c0_i32_1 = arith.constant 0 : i32
    return %c0_i32, %c0_i32_0 : i32, i32
  }
  func.func @transform_4(%arg0: i32) -> (i32, i32) {
    %c0_i32 = arith.constant 0 : i32
    %c0_i32_0 = arith.constant 0 : i32
    %c0_i32_1 = arith.constant 0 : i32
    return %c0_i32, %c0_i32_0 : i32, i32
  }
  func.func @transform_5(%arg0: i32) -> (i32, i32) {
    %c0_i32 = arith.constant 0 : i32
    %c0_i32_0 = arith.constant 0 : i32
    %c0_i32_1 = arith.constant 0 : i32
    return %c0_i32, %c0_i32_0 : i32, i32
  }
  func.func @transform_6(%arg0: i32) -> (i32, i32) {
    %c0_i32 = arith.constant 0 : i32
    %c0_i32_0 = arith.constant 0 : i32
    %c0_i32_1 = arith.constant 0 : i32
    return %c0_i32, %c0_i32_0 : i32, i32
  }
  func.func @transform_7(%arg0: i32) -> (i32, i32) {
    %c0_i32 = arith.constant 0 : i32
    %c0_i32_0 = arith.constant 0 : i32
    return %arg0, %c0_i32 : i32, i32
  }
}

</mosaic_0001>

<bundles_post_ra>
// kernel: tpu_custom_call.1
= control target key start
LH: loop header
LB: loop body
LE: loop exit
PB: predicated region body
PF: predicated region fallthrough
CT: control target
= control target key end

     0   :  { %12 = vsyncpa [#allocation3], 0  ;;  %s569_s0 = inlined_call_operand.hbm [shape: f32[8,16], index: 0, kind: input, shape index: {}]   ;;  %s570_s1 = inlined_call_operand.hbm [shape: bf16[16,32], index: 1, kind: input, shape index: {}]   ;;  %s571_s2 = inlined_call_operand.vmem [shape: f32[1,32], index: 2, kind: input, shape index: {}]   ;;  %s572_s3 = inlined_call_operand.hbm [shape: bf16[32,32], index: 3, kind: input, shape index: {}]   ;;  %s573_s4 = inlined_call_operand.vmem [shape: f32[1,32], index: 4, kind: input, shape index: {}]   ;;  %s574_s5 = inlined_call_operand.hbm [shape: bf16[32,128], index: 5, kind: input, shape index: {}]   ;;  %s575_s6 = inlined_call_operand.vmem [shape: f32[1,128], index: 6, kind: input, shape index: {}]   ;;  %s576_s7 = inlined_call_operand.hbm [shape: f32[8,128], index: 7, kind: output, shape index: {}]  }
   0x1   :  { %13 = vsyncpa [#allocation6], 0 }
   0x2   :  { %14 = vsyncpa [#allocation9], 0 }
   0x3   :  { %15 = vsyncpa [#allocation4], 0  ;;  %s487_s24 = smov [#allocation5]  }
   0x4   :  { %s31_s25 = sshll.u32 %s487_s24, 4  ;;  %s32_s25 = int_to_ptr.vmem [resolvable:$true] %s31_s25 }
   0x5   :  { %s387_s26 = scalar_lea.vmem %s32_s25, 128  ;;  %p392_p1 = scmp.lt.s32.totalorder %s32_s25, %s32_s25 }
   0x6   :  { %p388_p0 = scmp.ne.s32.totalorder %s32_s25, %s387_s26  ;;  %p393_p2 = scmp.lt.s32.totalorder %s387_s26, %s387_s26 }
   0x8   :  { %p394_p3 = por %p393_p2, %p392_p1 }
   0xa   :  { %p395_p4 = pnand %p394_p3, %p388_p0 }
   0xc   :  { %398 = shalt.err (!%p395_p4)
}
   0xd   :  { %s488_s27 = smov 64   ;;  %s489_s28 = smov 4  }
   0xe   :  { %37 = dma.hbm_to_vmem [thread:$0]  %s570_s1, 128, %s32_s25, [#allocation6], %s488_s27, %s488_s27, %s489_s28  }
   0xf   :  { %s490_s8 = smov [#allocation2]   ;;  %s491_s10 = smov [#allocation7]  }
  0x10   :  { %s22_s9 = sshll.u32 %s490_s8, 4  ;;  %s45_s11 = sshll.u32 %s491_s10, 4  ;;  %s23_s9 = int_to_ptr.vmem [resolvable:$true] %s22_s9  ;;  %s46_s11 = int_to_ptr.vmem [resolvable:$true] %s45_s11 }
  0x11   :  { %s407_s12 = scalar_lea.vmem %s23_s9, 128  ;;  %p412_p6 = scmp.lt.s32.totalorder %s23_s9, %s23_s9 }
  0x12   :  { %p408_p5 = scmp.ne.s32.totalorder %s23_s9, %s407_s12  ;;  %p413_p7 = scmp.lt.s32.totalorder %s407_s12, %s407_s12 }
  0x14   :  { %p414_p8 = por %p413_p7, %p412_p6 }
  0x16   :  { %p415_p9 = pnand %p414_p8, %p408_p5 }
  0x18   :  { %418 = shalt.err (!%p415_p9)
}
  0x19   :  { %25 = dma.hbm_to_vmem [thread:$0]  %s569_s0, 128, %s23_s9, [#allocation3]  }
  0x1a   :  { %s427_s15 = scalar_lea.vmem %s46_s11, 256  ;;  %p432_p11 = scmp.lt.s32.totalorder %s46_s11, %s46_s11 }
  0x1b   :  { %p428_p10 = scmp.ne.s32.totalorder %s46_s11, %s427_s15  ;;  %p433_p12 = scmp.lt.s32.totalorder %s427_s15, %s427_s15 }
  0x1d   :  { %p434_p13 = por %p433_p12, %p432_p11 }
  0x1f   :  { %p435_p0 = pnand %p434_p13, %p428_p10 }
  0x21   :  { %438 = shalt.err (!%p435_p0)
}
  0x22   :  { %51 = dma.hbm_to_vmem [thread:$0]  %s572_s3, 256, %s46_s11, [#allocation6], %s488_s27, %s488_s27, %s489_s28  }
  0x23   :  { %s492_s17 = smov [#allocation8]  }
  0x24   :  { %s59_s18 = sshll.u32 %s492_s17, 4  ;;  %s60_s18 = int_to_ptr.vmem [resolvable:$true] %s59_s18 }
  0x25   :  { %s447_s19 = scalar_lea.vmem %s60_s18, 256  ;;  %p452_p2 = scmp.lt.s32.totalorder %s60_s18, %s60_s18 }
  0x26   :  { %p448_p1 = scmp.ne.s32.totalorder %s60_s18, %s447_s19  ;;  %p453_p3 = scmp.lt.s32.totalorder %s447_s19, %s447_s19 }
  0x28   :  { %p454_p4 = por %p453_p3, %p452_p2 }
  0x2a   :  { %p455_p5 = pnand %p454_p4, %p448_p1 }
  0x2c   :  { %458 = shalt.err (!%p455_p5)
}
  0x2d   :  { %65 = dma.hbm_to_vmem [thread:$0]  %s574_s5, 256, %s60_s18, [#allocation9], %s488_s27, %s488_s27, %s489_s28  }
  0x2e   :  { %479 = dma.done.wait [#allocation3], 128  }
  0x2f   :  { %480 = vsyncadd [#allocation3], 4294967168 }
  0x30   :  { %481 = dma.done.wait [#allocation6], 384  }
  0x31   :  { %482 = vsyncadd [#allocation6], 4294966912 }
  0x32   :  { %483 = dma.done.wait [#allocation9], 256  }
  0x33   :  { %484 = vsyncadd [#allocation9], 4294967040  ;;  %v493_v0 = vmov 0.0   ;;  %vm494_vm0 = vmmov 0   ;;  %v368_v1 = vld [vmem:[#allocation5] sm:$0xff]   ;;  %v81_v2 = vld [vmem:[#allocation2] sm:$0xff]  ;;  %v296_v36 = vlaneseq }
  0x34   :  { %337 = vmatprep.subr.bf16.mxu0 %v493_v0  ;;  %339 = vmatprep.mubr.msk.bf16.mxu0 %vm494_vm0, %v493_v0  ;;  %vm98_vm1 = vcmask 130048   ;;  %v82_v3 = vpack.c.bf16 %v81_v2, %v81_v2  ;;  %v369_v4 = vld [vmem:[#allocation7 + $0x8] sm:$0xff]   ;;  %v370_v5 = vld [vmem:[#allocation7] sm:$0xff]   ;;  %v371_v6 = vld [vmem:[#allocation8 + $0x8] sm:$0xff]   ;;  %vm167_vm2 = vcmask 261120  }
  0x35   :  { %343 = vmatprep.subr.bf16.mxu1 %v493_v0  ;;  %347 = vmatprep.mubr.msk.bf16.mxu1 %vm494_vm0, %v493_v0  ;;  %v318_v7 = vld [vmem:[%s571_s2] ss:$0 sm:$0xff]  ;;  %v297_v39 = vand.u32 127, %v296_v36 }
  0x36   :  { %338 = vmatpush3.bf16.msra.mxu0 %v368_v1  ;;  %344 = vmatpush3.bf16.msra.mxu1 %v369_v4  ;;  %v372_v15 = vld [vmem:[#allocation8] sm:$0xff]  }
  0x37   :  { %351 = vmatprep.subr.bf16.mxu0 %v493_v0  ;;  %345 = vmatprep.subr.bf16.mxu1 %v493_v0  ;;  %v321_v16 = vld [vmem:[%s573_s4] ss:$0 sm:$0xff]  ;;  %s495_s4 = smov [#allocation10]   ;;  %vm298_vm4 = vcmp.lt.s32.totalorder %v297_v39, 4 }
  0x38   :  { %v325_v24 = vld [vmem:[%s575_s6] ss:$0 sm:$0xff]  ;;  %s307_s6 = sshll.u32 %s495_s4, 4  ;;  %s308_s6 = int_to_ptr.vmem [resolvable:$true] %s307_s6 }
  0x39   :  { %340 = vmatmul.mubr.msk.bf16.vlgmr.msra.gmra.mxu0 %vm98_vm1, %v82_v3  ;;  %s459_s24 = scalar_lea.vmem %s308_s6, 128  ;;  %p464_p7 = scmp.lt.s32.totalorder %s308_s6, %s308_s6 }
  0x3a   :  { %355 = vmatprep.mubr.msk.bf16.mxu0 %vm494_vm0, %v493_v0  ;;  %346 = vmatpush3.bf16.msra.mxu1 %v370_v5  ;;  %p460_p6 = scmp.ne.s32.totalorder %s308_s6, %s459_s24  ;;  %p465_p8 = scmp.lt.s32.totalorder %s459_s24, %s459_s24 }
  0x3b   :  { %352 = vmatpush3.bf16.msra.mxu0 %v371_v6 }
  0x3c   :  { %353 = vmatprep.subr.bf16.mxu0 %v493_v0  ;;  %p466_p9 = por %p465_p8, %p464_p7 }
  0x3e   :  { %p467_p10 = pnand %p466_p9, %p460_p6 }
  0x3f   :  { %354 = vmatpush3.bf16.msra.mxu0 %v372_v15 }
  0xf9   :  { %v136_v8 = vpop.f32.mrf.mxu0 }
  0xfa   :  { %v137_v9 = vadd.f32 %v318_v7, %v136_v8 }
  0xfb   :  { %v341_v10 = vpop.f32.mrf.mxu0 }
  0xfc   :  { %v142_v11 = vmax.f32 %v137_v9, 0.0 }
  0xfd   :  { %v139_v12 = vpop.f32.mrf.mxu0 }
  0xfe   :  { %v143_v13 = vpack.c.bf16 %v142_v11, %v142_v11 }
  0xff   :  { %v342_v14 = vpop.f32.mrf.mxu0 }
 0x100   :  { %348 = vmatmul.mubr.msk.bf16.vlgmr.msra.gmra.mxu1 %vm167_vm2, %v143_v13 }
 0x1c0   :  { %v205_v17 = vpop.f32.mrf.mxu1 }
 0x1c1   :  { %v206_v18 = vadd.f32 %v321_v16, %v205_v17 }
 0x1c2   :  { %v349_v19 = vpop.f32.mrf.mxu1 }
 0x1c3   :  { %v211_v20 = vmax.f32 %v206_v18, 0.0 }
 0x1c4   :  { %v208_v21 = vpop.f32.mrf.mxu1 }
 0x1c5   :  { %v212_v22 = vpack.c.bf16 %v211_v20, %v211_v20 }
 0x1c6   :  { %v350_v23 = vpop.f32.mrf.mxu1 }
 0x1c7   :  { %356 = vmatmul.mubr.msk.bf16.vlgmr.msra.gmra.mxu0 %vm167_vm2, %v212_v22 }
 0x287   :  { %v273_v25 = vpop.f32.mrf.mxu0 }
 0x288   :  { %v274_v26 = vadd.f32 %v325_v24, %v273_v25 }
 0x289   :  { %v357_v27 = vpop.f32.mrf.mxu0 }
 0x28a   :  { %v282_v28 = vand.u32 2147483647, %v274_v26  ;;  %v281_v44 = vmax.f32 %v274_v26, 0.0 }
 0x28b   :  { %v276_v29 = vpop.f32.mrf.mxu0 }
 0x28c   :  { %v283_v30 = vsub.f32 0.0, %v282_v28 }
 0x28d   :  { %v358_v31 = vpop.f32.mrf.mxu0 }
 0x28e   :  { %v284_v32 = vmul.f32 1.442695, %v283_v30 }
 0x290   :  { %373 = vpow2.f32 %v284_v32 }
 0x29d   :  { %v374_v33 = vpop.eup %373 }
 0x29e   :  { %v286_v34 = vadd.f32 1.0, %v374_v33  ;;  %v289_v35 = vmul.f32 -0.5, %v374_v33  ;;  %v292_v38 = vand.u32 2147483647, %v374_v33 }
 0x2a0   :  { %375 = vlog2.f32 %v286_v34  ;;  %v290_v37 = vadd.f32 1.0, %v289_v35  ;;  %vm293_vm3 = vcmp.lt.f32.partialorder %v292_v38, 0.0004427343 }
 0x2a1   :  { %377 = vtanh.f32 %v274_v26 }
 0x2a2   :  { %v291_v43 = vmul.f32 %v374_v33, %v290_v37 }
 0x2ad   :  { %v376_v40 = vpop.eup %375 }
 0x2ae   :  { %v378_v41 = vpop.eup %377  ;;  %v288_v42 = vmul.f32 0.6931472, %v376_v40 }
 0x2af   :  { %v280_v47 = vmul.f32 2.0, %v378_v41 }
 0x2b0   :  { %v294_v45 = vsel %vm293_vm3, %v291_v43, %v288_v42 }
 0x2b1   :  { %v295_v46 = vadd.f32 %v294_v45, %v281_v44 }
 0x2b3   :  { %v299_v48 = vsel %vm298_vm4, %v280_v47, %v295_v46 }
 0x2b4   :  { %300 = vst [vmem:[#allocation10] sm:$0xff] %v299_v48 }
 0x2b5   :  { %470 = shalt.err (!%p467_p10)
}
 0x2b6   :  { %310 = dma.vmem_to_hbm [thread:$0]  %s308_s6, 128, %s576_s7, [#allocation4]  }
 0x2b7   :  { %485 = dma.done.wait [#allocation4], 128  }
 0x2b8   :  { %486 = vsyncadd [#allocation4], 4294967168 }
 0x2b9   :  { %314 = vsyncpa [#allocation3], 1 }
 0x2ba   :  { %315 = vsyncpa [#allocation6], 1 }
 0x2bb   :  { %316 = vsyncpa [#allocation9], 1 }
 0x2bc   :  { %317 = vsyncpa [#allocation4], 1 }

</bundles_post_ra>
